<compile_context>
chip_gen: v7x
topology: tpu7x:2x2x1
jax: 0.10.0
libtpu: 0.0.40
codegen_flags: <defaults>
</compile_context>

<pallas_src>
import functools

import jax
import jax.numpy as jnp
from jax.experimental import pallas as pl
from jax.experimental.pallas import tpu as pltpu


def _filter_selector_kernel(sel_ref, out_ref, *, chunk_bounds, tile_c):
    """Broadcast the n pre-weighted filter rows over their channel chunks.

    sel_ref: (n, len_seq) VMEM  -- already gathered + weighted rows (resident).
    out_ref: (tile_c, len_seq) VMEM -- one channel tile of the output.
    chunk_bounds: static tuple of (start, end) channel ranges, one per row.
    """
    base = pl.program_id(0) * tile_c
    # Global channel id of every element in this tile (2-D iota: TPU-friendly).
    ch = base + jax.lax.broadcasted_iota(jnp.int32, out_ref.shape, 0)
    sel = sel_ref[...]                                   # (n, len_seq), tiny
    acc = jnp.zeros(out_ref.shape, dtype=sel.dtype)
    for i, (start, end) in enumerate(chunk_bounds):      # n small & static
        row = sel[i:i + 1, :]                            # (1, len_seq) static slice
        acc = jnp.where((ch >= start) & (ch < end), row, acc)
    out_ref[...] = acc.astype(out_ref.dtype)


def filter_selector(filters, weights, channel, n, *, out_dtype=None, tile_c=None):
    """Pallas implementation of FilterSelector.forward.

    filters: (num_freq, len_seq); weights: (num_freq,);
    returns (channel, len_seq).
    """
    num_freq, len_seq = filters.shape
    assert 1 <= n <= num_freq, f"n={n} must be in [1, num_freq={num_freq}]"
    assert channel >= n, f"channel={channel} must be >= n={n}"

    if out_dtype is None:
        # Matches torch's dtype promotion of (filters * weights).  Pass bf16 to
        # halve the HBM-write-bound output bytes when semantics permit.
        out_dtype = jnp.result_type(filters.dtype, weights.dtype)
    out_dtype = jnp.dtype(out_dtype)

    # ---- tiny plain-JAX glue: O(num_freq * len_seq) work ----
    # TODO(synk): lax.top_k tie ordering is not guaranteed to match torch.topk
    #             when weights contain ties (the default all-ones init).
    _, top_idx = jax.lax.top_k(weights, n)
    weighted = filters * weights[:, None]
    selected = weighted[top_idx].astype(out_dtype)       # (n, len_seq) only

    # Static chunk boundaries (last chunk absorbs channel % n).
    chunk_size = channel // n
    chunk_bounds = tuple(
        (i * chunk_size, (i + 1) * chunk_size if i != n - 1 else channel)
        for i in range(n))

    # ---- channel-tiled grid: stream the (channel, len_seq) HBM write ----
    itemsize = out_dtype.itemsize
    if tile_c is None:
        target_block_bytes = 2 * 1024 * 1024             # ~2 MiB/block; x2 for
        max_tile_c = max(8, (target_block_bytes // (len_seq * itemsize)) // 8 * 8)
        tile_c = channel if channel <= max_tile_c else max_tile_c
    assert tile_c == channel or (tile_c % 8 == 0 and tile_c <= channel), (
        "tile_c must equal channel or be a multiple of 8 not exceeding channel")

    grid = (pl.cdiv(channel, tile_c),)
    kernel = functools.partial(_filter_selector_kernel,
                               chunk_bounds=chunk_bounds, tile_c=tile_c)

    cost = pl.CostEstimate(
        flops=channel * len_seq,
        transcendentals=0,
        bytes_accessed=(n + channel) * len_seq * itemsize)

    return pl.pallas_call(
        kernel,
        out_shape=jax.ShapeDtypeStruct((channel, len_seq), out_dtype),
        grid=grid,
        in_specs=[
            # Whole (n, len_seq) selected-rows table; constant block index =>
            # fetched once and resident across all grid steps.
            pl.BlockSpec((n, len_seq), lambda i: (0, 0)),
        ],
        out_specs=pl.BlockSpec((tile_c, len_seq), lambda i: (i, 0)),
        compiler_params=pltpu.CompilerParams(
            dimension_semantics=("parallel",)),
        cost_estimate=cost,
    )(selected)


def filter_selector_ref(filters, weights, channel, n):
    """Pure-JAX reference mirroring the PyTorch forward exactly."""
    weighted = filters * weights[:, None]
    _, top_idx = jax.lax.top_k(weights, n)
    selected = weighted[top_idx]
    chunk_size = channel // n
    out = jnp.zeros((channel, filters.shape[1]), weighted.dtype)
    for i in range(n):
        start = i * chunk_size
        end = (i + 1) * chunk_size if i != n - 1 else channel
        out = out.at[start:end].set(selected[i])
    return out


if __name__ == "__main__":
    key = jax.random.PRNGKey(0)
    k1, k2, k3, k4 = jax.random.split(key, 4)

    # Case 1: toy shapes consistent with FilterSelector(channel, num_freq, len_seq, n);
    # channel % n != 0 exercises the last-chunk remainder path.
    channel, num_freq, len_seq, n = 18, 8, 16, 4
    filters = jax.random.normal(k1, (num_freq, len_seq), dtype=jnp.float32)
    # Deterministic, non-tied weights so the top-k selection is well defined.
    weights = jax.random.uniform(k2, (num_freq,), dtype=jnp.float32)
    out = jax.block_until_ready(filter_selector(filters, weights, channel, n))
    ref = filter_selector_ref(filters, weights, channel, n)
    assert out.shape == (channel, len_seq) and out.dtype == ref.dtype
    assert jnp.allclose(out, ref, atol=1e-6), "Pallas mismatch (case 1)"

    # Case 2: multi-tile channel grid (ragged last block) with tiles crossing
    # chunk boundaries, lane-full last dim.
    channel, num_freq, len_seq, n = 200, 12, 128, 3
    filters = jax.random.normal(k3, (num_freq, len_seq), dtype=jnp.float32)
    weights = jax.random.uniform(k4, (num_freq,), dtype=jnp.float32)
    out = jax.block_until_ready(
        filter_selector(filters, weights, channel, n, tile_c=64))
    ref = filter_selector_ref(filters, weights, channel, n)
    assert out.shape == (channel, len_seq)
    assert jnp.allclose(out, ref, atol=1e-6), "Pallas mismatch (case 2)"

    print("KERNEL_OK")
</pallas_src>

<mosaic_0001>
module attributes {stable_mosaic.version = 11 : i64} {
  func.func @_filter_selector_kernel(%arg0: i32, %arg1: memref<4x16xf32, #tpu.memory_space<vmem>>, %arg2: memref<18x16xf32, #tpu.memory_space<vmem>>) attributes {dimension_semantics = [#tpu.dimension_semantics<parallel>], iteration_bounds = array<i64: 1>, scalar_prefetch = 0 : i64, scratch_operands = 0 : i64, tpu.core_type = #tpu.core_type<tc>, window_params = [{pipeline_mode = #tpu.pipeline_mode<synchronous>, transform_indices = @transform_0, window_bounds = array<i64: 4, 16>}, {transform_indices = @transform_1, window_bounds = array<i64: 18, 16>}]} {
    %c18_i32 = arith.constant 18 : i32
    %0 = arith.muli %arg0, %c18_i32 : i32
    %1 = tpu.iota {dimensions = array<i32: 0>} : vector<18x16xi32>
    %2 = vector.broadcast %0 : i32 to vector<18x16xi32>
    %3 = arith.addi %2, %1 : vector<18x16xi32>
    %c0 = arith.constant 0 : index
    %c0_0 = arith.constant 0 : index
    %4 = vector.load %arg1[%c0, %c0_0] : memref<4x16xf32, #tpu.memory_space<vmem>>, vector<4x16xf32>
    %cst = arith.constant 0.000000e+00 : f32
    %5 = vector.broadcast %cst : f32 to vector<18x16xf32>
    %6 = vector.extract_strided_slice %4 {offsets = [0, 0], sizes = [1, 16], strides = [1, 1]} : vector<4x16xf32> to vector<1x16xf32>
    %c0_i32 = arith.constant 0 : i32
    %7 = vector.broadcast %c0_i32 : i32 to vector<18x16xi32>
    %8 = arith.cmpi sge, %3, %7 : vector<18x16xi32>
    %c4_i32 = arith.constant 4 : i32
    %9 = vector.broadcast %c4_i32 : i32 to vector<18x16xi32>
    %10 = arith.cmpi slt, %3, %9 : vector<18x16xi32>
    %11 = arith.andi %8, %10 : vector<18x16xi1>
    %12 = vector.shape_cast %6 : vector<1x16xf32> to vector<1x16xf32>
    %13 = vector.broadcast %12 : vector<1x16xf32> to vector<18x16xf32>
    %14 = arith.select %11, %13, %5 : vector<18x16xi1>, vector<18x16xf32>
    %15 = vector.extract_strided_slice %4 {offsets = [1, 0], sizes = [1, 16], strides = [1, 1]} : vector<4x16xf32> to vector<1x16xf32>
    %c4_i32_1 = arith.constant 4 : i32
    %16 = vector.broadcast %c4_i32_1 : i32 to vector<18x16xi32>
    %17 = arith.cmpi sge, %3, %16 : vector<18x16xi32>
    %c8_i32 = arith.constant 8 : i32
    %18 = vector.broadcast %c8_i32 : i32 to vector<18x16xi32>
    %19 = arith.cmpi slt, %3, %18 : vector<18x16xi32>
    %20 = arith.andi %17, %19 : vector<18x16xi1>
    %21 = vector.shape_cast %15 : vector<1x16xf32> to vector<1x16xf32>
    %22 = vector.broadcast %21 : vector<1x16xf32> to vector<18x16xf32>
    %23 = arith.select %20, %22, %14 : vector<18x16xi1>, vector<18x16xf32>
    %24 = vector.extract_strided_slice %4 {offsets = [2, 0], sizes = [1, 16], strides = [1, 1]} : vector<4x16xf32> to vector<1x16xf32>
    %c8_i32_2 = arith.constant 8 : i32
    %25 = vector.broadcast %c8_i32_2 : i32 to vector<18x16xi32>
    %26 = arith.cmpi sge, %3, %25 : vector<18x16xi32>
    %c12_i32 = arith.constant 12 : i32
    %27 = vector.broadcast %c12_i32 : i32 to vector<18x16xi32>
    %28 = arith.cmpi slt, %3, %27 : vector<18x16xi32>
    %29 = arith.andi %26, %28 : vector<18x16xi1>
    %30 = vector.shape_cast %24 : vector<1x16xf32> to vector<1x16xf32>
    %31 = vector.broadcast %30 : vector<1x16xf32> to vector<18x16xf32>
    %32 = arith.select %29, %31, %23 : vector<18x16xi1>, vector<18x16xf32>
    %33 = vector.extract_strided_slice %4 {offsets = [3, 0], sizes = [1, 16], strides = [1, 1]} : vector<4x16xf32> to vector<1x16xf32>
    %c12_i32_3 = arith.constant 12 : i32
    %34 = vector.broadcast %c12_i32_3 : i32 to vector<18x16xi32>
    %35 = arith.cmpi sge, %3, %34 : vector<18x16xi32>
    %c18_i32_4 = arith.constant 18 : i32
    %36 = vector.broadcast %c18_i32_4 : i32 to vector<18x16xi32>
    %37 = arith.cmpi slt, %3, %36 : vector<18x16xi32>
    %38 = arith.andi %35, %37 : vector<18x16xi1>
    %39 = vector.shape_cast %33 : vector<1x16xf32> to vector<1x16xf32>
    %40 = vector.broadcast %39 : vector<1x16xf32> to vector<18x16xf32>
    %41 = arith.select %38, %40, %32 : vector<18x16xi1>, vector<18x16xf32>
    %c0_5 = arith.constant 0 : index
    %c0_6 = arith.constant 0 : index
    %42 = vector.load %arg2[%c0_5, %c0_6] : memref<18x16xf32, #tpu.memory_space<vmem>>, vector<18x16xf32>
    tpu.vector_store %arg2[%c0_5, %c0_6], %41 {strides = array<i32>} : memref<18x16xf32, #tpu.memory_space<vmem>>, vector<18x16xf32>,
    return
  }
  func.func @transform_0(%arg0: i32) -> (i32, i32) {
    %c0_i32 = arith.constant 0 : i32
    %c0_i32_0 = arith.constant 0 : i32
    %c0_i32_1 = arith.constant 0 : i32
    return %c0_i32, %c0_i32_0 : i32, i32
  }
  func.func @transform_1(%arg0: i32) -> (i32, i32) {
    %c0_i32 = arith.constant 0 : i32
    %c0_i32_0 = arith.constant 0 : i32
    return %arg0, %c0_i32 : i32, i32
  }
}

</mosaic_0001>

<bundles_post_ra>
// kernel: tpu_custom_call.1
= control target key start
LH: loop header
LB: loop body
LE: loop exit
PB: predicated region body
PF: predicated region fallthrough
CT: control target
= control target key end

     0   :  { %6 = vsyncpa [#allocation3], 0  ;;  %s129_s6 = smov [#allocation2]   ;;  %s162_s0 = inlined_call_operand.hbm [shape: f32[4,16], index: 0, kind: input, shape index: {}]   ;;  %s163_s1 = inlined_call_operand.vmem [shape: f32[18,16], index: 1, kind: output, shape index: {}]  }
   0x1   :  { %s13_s7 = sshll.u32 %s129_s6, 4  ;;  %s105_s10 = scalar_lea.hbm %s162_s0, 64  ;;  %s14_s7 = int_to_ptr.vmem [resolvable:$true] %s13_s7 }
   0x2   :  { %p106_p0 = scmp.ne.s32.totalorder %s162_s0, %s105_s10  ;;  %p109_p1 = scmp.lt.u32.totalorder %s105_s10, %s162_s0 }
   0x4   :  { %p111_p2 = pnand %p109_p1, %p106_p0 }
   0x6   :  { %114 = shalt.err (!%p111_p2)
}
   0x7   :  { %s115_s15 = scalar_lea.vmem %s14_s7, 64  ;;  %p120_p4 = scmp.lt.s32.totalorder %s14_s7, %s14_s7 }
   0x8   :  { %p116_p3 = scmp.ne.s32.totalorder %s14_s7, %s115_s15  ;;  %p121_p5 = scmp.lt.s32.totalorder %s115_s15, %s115_s15 }
   0xa   :  { %p122_p6 = por %p121_p5, %p120_p4 }
   0xc   :  { %p123_p7 = pnand %p122_p6, %p116_p3 }
   0xe   :  { %126 = shalt.err (!%p123_p7)
}
   0xf   :  { %16 = dma.hbm_to_vmem [thread:$0]  %s162_s0, 64, %s14_s7, [#allocation3]  }
  0x10   :  { %127 = dma.done.wait [#allocation3], 64  }
  0x11   :  { %128 = vsyncadd [#allocation3], 4294967232  ;;  %v21_v0 = vlaneseq  ;;  %vm97_vm1 = vcmask 123904   ;;  %v29_v8 = vld [vmem:[#allocation2] sm:$0xf]  ;;  %vm94_vm6 = vcmask 130048  }
  0x13   :  { %v22_v1 = vshrl.u32 %v21_v0, 7 }
  0x15   :  { %v41_v2 = vsub.s32 0, %v22_v1  ;;  %v57_v3 = vsub.s32 1, %v22_v1  ;;  %v23_v4 = vadd.s32 8, %v22_v1  ;;  %v73_v5 = vsub.s32 2, %v22_v1 }
  0x16   :  { %v89_v6 = vsub.s32 3, %v22_v1  ;;  %v24_v7 = vadd.s32 16, %v22_v1  ;;  %vm33_vm0 = vcmp.lt.s32.totalorder %v22_v1, 4  ;;  %vm46_vm2 = vcmp.ge.s32.totalorder %v22_v1, 4 }
  0x17   :  { %vm66_vm3 = vcmp.lt.s32.totalorder %v23_v4, 12  ;;  %vm79_vm4 = vcmp.ge.s32.totalorder %v23_v4, 12  ;;  %v42_v9 = vrot.slane %v29_v8, %v41_v2  ;;  %v58_v10 = vrot.slane %v29_v8, %v57_v3 }
  0x18   :  { %vm83_vm5 = vcmp.lt.s32.totalorder %v24_v7, 18  ;;  %v74_v11 = vrot.slane %v29_v8, %v73_v5  ;;  %v90_v12 = vrot.slane %v29_v8, %v89_v6 }
  0x19   :  { %v43_v13 = vsel %vm33_vm0, %v42_v9, 0.0 }
  0x1a   :  { %v76_v14 = vsel %vm66_vm3, %v74_v11, 0.0  ;;  %v93_v15 = vsel %vm83_vm5, %v90_v12, 0.0  ;;  %v59_v16 = vsel %vm46_vm2, %v58_v10, %v43_v13 }
  0x1b   :  { %v92_v17 = vsel %vm79_vm4, %v90_v12, %v76_v14  ;;  %98 = vst.msk [vmem:[%s163_s1 + $0x10] sm:$0x3] %vm97_vm1, %v93_v15 }
  0x1c   :  { %95 = vst.msk [vmem:[%s163_s1] sm:$0xff] %vm94_vm6, %v59_v16  ;;  %96 = vst.msk [vmem:[%s163_s1 + $0x8] sm:$0xff] %vm94_vm6, %v92_v17 }
  0x1d   :  { %103 = vsyncpa [#allocation3], 1 }

</bundles_post_ra>
